<compile_context>
chip_gen: v5e
topology: v5e:2x2
jax: 0.10.0
libtpu: 0.0.40
codegen_flags: <defaults>
</compile_context>

<pallas_src>
import jax
import jax.numpy as jnp
import numpy as np
from jax.experimental import pallas as pl
from jax.experimental.pallas import tpu as pltpu


# ---------------------------------------------------------------------------
# Host-side (numpy) 1-D bilinear-interpolation matrix, align_corners=False.
# ---------------------------------------------------------------------------
def _interp_matrix(out_size, in_size):
    """(out_size, in_size) f32 matrix R so that R @ v == F.interpolate(v)."""
    scale = in_size / out_size
    dst = np.arange(out_size, dtype=np.float64)
    src = np.maximum((dst + 0.5) * scale - 0.5, 0.0)
    i0 = np.minimum(np.floor(src), in_size - 1).astype(np.int64)
    i1 = np.minimum(i0 + 1, in_size - 1)
    w1 = (src - i0).astype(np.float32)
    rows = np.arange(out_size)
    m = np.zeros((out_size, in_size), np.float32)
    m[rows, i0] += 1.0 - w1
    m[rows, i1] += w1            # i0 == i1 at the clamp -> weights sum to 1
    return m


# ---------------------------------------------------------------------------
# Pallas kernel: local Conv1x1+BN+ReLU, modulate with sig, single store.
# ---------------------------------------------------------------------------
def _fuse_kernel(xl_ref, sig_ref, wl_ref, bl_ref, out_ref):
    # xl_ref : (C, TS)  local-feature tile (channel-first, flat spatial on lanes)
    # sig_ref: (C, TS)  upsampled global activation, same layout
    # wl_ref : (C, C)   fused Conv1x1+BN weight (left-multiply form)
    # bl_ref : (C, 1)   fused bias (f32)
    # out_ref: (C, TS)
    local = jnp.dot(wl_ref[...], xl_ref[...], preferred_element_type=jnp.float32)
    local = jnp.maximum(local + bl_ref[...], 0.0)
    sig = sig_ref[...].astype(jnp.float32)
    out_ref[...] = (local * sig + sig).astype(out_ref.dtype)


# ---------------------------------------------------------------------------
# Tiling choice + wrapper.
# ---------------------------------------------------------------------------
def _choose_tile(S, C, itemsize, target_bytes=4 * 1024 * 1024,
                 hard_cap_bytes=24 * 1024 * 1024):
    """Largest tile TS of the flattened spatial axis S such that TS is a
    multiple of 128 (or the full extent), divides S, and the (C, TS) block
    stays under target_bytes."""
    divisors = [d for d in range(1, S + 1) if S % d == 0]
    lane_ok = [d for d in divisors if d % 128 == 0 or d == S]
    fits = [d for d in lane_ok if C * d * itemsize <= target_bytes]
    if fits:
        return max(fits)
    small = [d for d in lane_ok if C * d * itemsize <= hard_cap_bytes]
    if small:
        return min(small)
    # Awkward S with no lane-aligned divisor that fits VMEM: accept a
    # non-dividing / non-aligned tile (Pallas masks the boundary block).
    ok = [d for d in divisors if C * d * itemsize <= target_bytes]
    return max(ok) if ok else 1


def injection_multi_sum(x_l, x_g, params):
    """x_l: (B, C, H, W) local, x_g: (B, C, Hg, Wg) global -> (B, C, H, W)."""
    B, C, H, W = x_l.shape
    Bg, Cg, Hg, Wg = x_g.shape
    assert (Bg, Cg) == (B, C)
    S = H * W
    itemsize = jnp.dtype(x_l.dtype).itemsize

    # ---- Global branch (negligible FLOPs) hoisted to XLA ------------------
    hi = jax.lax.Precision.HIGHEST
    wg = params["wg"].astype(jnp.float32)
    bg = params["bg"].astype(jnp.float32)
    gact = jnp.einsum("oc,bcgq->bogq", wg, x_g.astype(jnp.float32),
                      precision=hi) + bg.reshape(1, C, 1, 1)      # (B,C,Hg,Wg)
    rw = jnp.asarray(_interp_matrix(W, Wg))                       # (W, Wg)
    rh = jnp.asarray(_interp_matrix(H, Hg))                       # (H, Hg)
    gw = jnp.einsum("bogq,wq->bogw", gact, rw, precision=hi)      # (B,C,Hg,W)
    sig = jnp.einsum("bogw,hg->bohw", gw, rh, precision=hi)       # (B,C,H,W)
    sig = sig.astype(x_l.dtype)

    # ---- Local branch + modulate, fused in Pallas --------------------------
    TS = _choose_tile(S, C, itemsize)
    grid = (B, pl.cdiv(S, TS))

    wl = params["wl"].astype(x_l.dtype)        # native-dtype MXU path (bf16 stays bf16)
    bl = params["bl"].astype(jnp.float32)      # added to the f32 accumulator

    xl_flat = x_l.reshape(B, C, S)             # free reshapes, no transposes
    sig_flat = sig.reshape(B, C, S)

    # Explicit VMEM footprint (x_l + sig + out blocks, double-buffered, + params),
    # with headroom; capped at 40 MiB so it also fits v7x's 64 MiB/TC.
    block_bytes = C * TS * itemsize
    footprint = 3 * 2 * block_bytes + (C * C + C) * jnp.dtype(wl.dtype).itemsize
    vmem_limit = int(min(max(2 * footprint + (8 << 20), 24 << 20), 40 << 20))

    out_flat = pl.pallas_call(
        _fuse_kernel,
        out_shape=jax.ShapeDtypeStruct((B, C, S), x_l.dtype),
        grid_spec=pltpu.PrefetchScalarGridSpec(
            num_scalar_prefetch=0,
            grid=grid,
            in_specs=[
                pl.BlockSpec((None, C, TS), lambda b, t: (b, 0, t)),
                pl.BlockSpec((None, C, TS), lambda b, t: (b, 0, t)),
                pl.BlockSpec((C, C), lambda b, t: (0, 0)),   # DMA'd once (index const)
                pl.BlockSpec((C, 1), lambda b, t: (0, 0)),
            ],
            out_specs=pl.BlockSpec((None, C, TS), lambda b, t: (b, 0, t)),
        ),
        compiler_params=pltpu.CompilerParams(
            dimension_semantics=("parallel", "parallel"),
            vmem_limit_bytes=vmem_limit,
        ),
    )(xl_flat, sig_flat, wl, bl)

    return out_flat.reshape(B, C, H, W)


# ---------------------------------------------------------------------------
# Conv1x1 + BN(eval) fusion and random parameters.
# ---------------------------------------------------------------------------
def _fuse_conv_bn(w_conv, gamma, beta, mean, var, eps=1e-5):
    """Fold 1x1 conv (no bias) + BN(eval) into y = W_eff @ x + b_eff."""
    scale = gamma / jnp.sqrt(var + eps)              # (Cout,)
    w_eff = w_conv * scale[:, None]                  # (Cout, Cin)
    b_eff = (beta - scale * mean)[:, None]           # (Cout, 1)
    return w_eff, b_eff


def make_params(key, dim, dtype=jnp.float32):
    ks = jax.random.split(key, 10)

    def branch(kw, kg, kb, km, kv):
        w = jax.random.normal(kw, (dim, dim), dtype) / jnp.sqrt(jnp.asarray(dim, dtype))
        gamma = 1.0 + 0.1 * jax.random.normal(kg, (dim,), dtype)
        beta = 0.1 * jax.random.normal(kb, (dim,), dtype)
        mean = 0.1 * jax.random.normal(km, (dim,), dtype)
        var = jnp.abs(jax.random.normal(kv, (dim,), dtype)) + 0.5
        return _fuse_conv_bn(w, gamma, beta, mean, var)

    wl, bl = branch(*ks[0:5])   # local_embedding (conv + BN + ReLU)
    wg, bg = branch(*ks[5:10])  # global_act      (conv + BN, no act)
    return {"wl": wl, "bl": bl, "wg": wg, "bg": bg}


# ---------------------------------------------------------------------------
# Pure-JAX reference for a correctness check.
# ---------------------------------------------------------------------------
def reference(x_l, x_g, params):
    B, C, H, W = x_l.shape
    _, _, Hg, Wg = x_g.shape
    hi = jax.lax.Precision.HIGHEST
    local = jnp.einsum("oc,bchw->bohw", params["wl"], x_l, precision=hi) \
        + params["bl"].reshape(1, C, 1, 1)
    local = jnp.maximum(local, 0.0)
    gact = jnp.einsum("oc,bchw->bohw", params["wg"], x_g, precision=hi) \
        + params["bg"].reshape(1, C, 1, 1)
    rh = jnp.asarray(_interp_matrix(H, Hg))          # (H, Hg)
    rw = jnp.asarray(_interp_matrix(W, Wg))          # (W, Wg)
    sig = jnp.einsum("hg,bcgq,wq->bchw", rh, gact, rw, precision=hi)
    return local * sig + sig


if __name__ == "__main__":
    key = jax.random.PRNGKey(0)
    k_xl, k_xg, k_p = jax.random.split(key, 3)

    B, C = 2, 32
    H, W = 16, 16       # local (high-res) features
    Hg, Wg = 8, 8       # global (low-res) features

    x_l = jax.random.normal(k_xl, (B, C, H, W), jnp.float32)
    x_g = jax.random.normal(k_xg, (B, C, Hg, Wg), jnp.float32)
    params = make_params(k_p, C)

    fn = jax.jit(injection_multi_sum)
    out = jax.block_until_ready(fn(x_l, x_g, params))
    ref = jax.block_until_ready(reference(x_l, x_g, params))

    assert out.shape == (B, C, H, W), out.shape
    err = float(jnp.max(jnp.abs(out - ref)))
    assert jnp.allclose(out, ref, atol=2e-3, rtol=2e-3), err

    print("KERNEL_OK")
</pallas_src>

<mosaic_0001>
module attributes {stable_mosaic.version = 11 : i64} {
  func.func @_fuse_kernel(%arg0: i32, %arg1: i32, %arg2: memref<1x32x256xf32, #tpu.memory_space<vmem>>, %arg3: memref<1x32x256xf32, #tpu.memory_space<vmem>>, %arg4: memref<32x32xf32, #tpu.memory_space<vmem>>, %arg5: memref<32x1xf32, #tpu.memory_space<vmem>>, %arg6: memref<1x32x256xf32, #tpu.memory_space<vmem>>) attributes {dimension_semantics = [#tpu.dimension_semantics<parallel>, #tpu.dimension_semantics<parallel>], iteration_bounds = array<i64: 2, 1>, scalar_prefetch = 0 : i64, scratch_operands = 0 : i64, tpu.core_type = #tpu.core_type<tc>, window_params = [{transform_indices = @transform_0, window_bounds = array<i64: 1, 32, 256>}, {transform_indices = @transform_1, window_bounds = array<i64: 1, 32, 256>}, {pipeline_mode = #tpu.pipeline_mode<synchronous>, transform_indices = @transform_2, window_bounds = array<i64: 32, 32>}, {pipeline_mode = #tpu.pipeline_mode<synchronous>, transform_indices = @transform_3, window_bounds = array<i64: 32, 1>}, {transform_indices = @transform_4, window_bounds = array<i64: 1, 32, 256>}]} {
    %c0 = arith.constant 0 : index
    %c0_0 = arith.constant 0 : index
    %0 = vector.load %arg4[%c0, %c0_0] : memref<32x32xf32, #tpu.memory_space<vmem>>, vector<32x32xf32>
    %c0_1 = arith.constant 0 : index
    %c0_2 = arith.constant 0 : index
    %c0_3 = arith.constant 0 : index
    %1 = vector.load %arg2[%c0_1, %c0_2, %c0_3] : memref<1x32x256xf32, #tpu.memory_space<vmem>>, vector<1x32x256xf32>
    %2 = vector.shape_cast %1 : vector<1x32x256xf32> to vector<32x256xf32>
    %cst = arith.constant dense<0.000000e+00> : vector<32x256xf32>
    %3 = tpu.matmul %0, %2, %cst {dimension_numbers = #tpu.dot_dimension_numbers<[1], [0], [0], [1], [0, 0, 1, 1], [], []>} : vector<32x32xf32>, vector<32x256xf32>, vector<32x256xf32> -> vector<32x256xf32>
    %c0_4 = arith.constant 0 : index
    %c0_5 = arith.constant 0 : index
    %4 = vector.load %arg5[%c0_4, %c0_5] : memref<32x1xf32, #tpu.memory_space<vmem>>, vector<32x1xf32>
    %5 = vector.broadcast %4 : vector<32x1xf32> to vector<32x256xf32>
    %6 = arith.addf %3, %5 : vector<32x256xf32>
    %cst_6 = arith.constant 0.000000e+00 : f32
    %7 = vector.broadcast %cst_6 : f32 to vector<32x256xf32>
    %8 = arith.maximumf %6, %7 : vector<32x256xf32>
    %c0_7 = arith.constant 0 : index
    %c0_8 = arith.constant 0 : index
    %c0_9 = arith.constant 0 : index
    %9 = vector.load %arg3[%c0_7, %c0_8, %c0_9] : memref<1x32x256xf32, #tpu.memory_space<vmem>>, vector<1x32x256xf32>
    %10 = vector.shape_cast %9 : vector<1x32x256xf32> to vector<32x256xf32>
    %11 = arith.mulf %8, %10 : vector<32x256xf32>
    %12 = arith.addf %11, %10 : vector<32x256xf32>
    %c0_10 = arith.constant 0 : index
    %c0_11 = arith.constant 0 : index
    %c0_12 = arith.constant 0 : index
    %13 = vector.load %arg6[%c0_10, %c0_11, %c0_12] : memref<1x32x256xf32, #tpu.memory_space<vmem>>, vector<1x32x256xf32>
    %14 = vector.shape_cast %13 : vector<1x32x256xf32> to vector<32x256xf32>
    %15 = vector.shape_cast %12 : vector<32x256xf32> to vector<1x32x256xf32>
    tpu.vector_store %arg6[%c0_10, %c0_11, %c0_12], %15 {strides = array<i32>} : memref<1x32x256xf32, #tpu.memory_space<vmem>>, vector<1x32x256xf32>,
    return
  }
  func.func @transform_0(%arg0: i32, %arg1: i32) -> (i32, i32, i32) {
    %c0_i32 = arith.constant 0 : i32
    %c0_i32_0 = arith.constant 0 : i32
    return %arg0, %c0_i32, %arg1 : i32, i32, i32
  }
  func.func @transform_1(%arg0: i32, %arg1: i32) -> (i32, i32, i32) {
    %c0_i32 = arith.constant 0 : i32
    %c0_i32_0 = arith.constant 0 : i32
    return %arg0, %c0_i32, %arg1 : i32, i32, i32
  }
  func.func @transform_2(%arg0: i32, %arg1: i32) -> (i32, i32) {
    %c0_i32 = arith.constant 0 : i32
    %c0_i32_0 = arith.constant 0 : i32
    %c0_i32_1 = arith.constant 0 : i32
    return %c0_i32, %c0_i32_0 : i32, i32
  }
  func.func @transform_3(%arg0: i32, %arg1: i32) -> (i32, i32) {
    %c0_i32 = arith.constant 0 : i32
    %c0_i32_0 = arith.constant 0 : i32
    %c0_i32_1 = arith.constant 0 : i32
    return %c0_i32, %c0_i32_0 : i32, i32
  }
  func.func @transform_4(%arg0: i32, %arg1: i32) -> (i32, i32, i32) {
    %c0_i32 = arith.constant 0 : i32
    %c0_i32_0 = arith.constant 0 : i32
    return %arg0, %c0_i32, %arg1 : i32, i32, i32
  }
}

</mosaic_0001>

<bundles_post_ra>
// kernel: injection_multi_sum.1
= control target key start
LH: loop header
LB: loop body
LE: loop exit
PB: predicated region body
PF: predicated region fallthrough
CT: control target
= control target key end

     0   :  { %s634_s15 = smov 0   ;;  %s636_s16 = smov 0   ;;  %s727_s0 = inlined_call_operand.vmem [shape: f32[2,32,256], index: 0, kind: input, shape index: {}]   ;;  %s728_s1 = inlined_call_operand.vmem [shape: f32[2,32,256], index: 1, kind: input, shape index: {}]   ;;  %s729_s2 = inlined_call_operand.vmem [shape: f32[32,32], index: 2, kind: input, shape index: {}]   ;;  %s730_s3 = inlined_call_operand.vmem [shape: f32[32,1], index: 3, kind: input, shape index: {}]   ;;  %s731_s4 = inlined_call_operand.vmem [shape: f32[2,32,256], index: 4, kind: output, shape index: {}]  }
   0x1   :  { %s638_s17 = smov 0  }
   0x2 LB: > { %s26_s18 = sadd.s32 1, %s602_s16  ;;  %p529_p0 = scmp.ge.s32.totalorder %s606_s17, 1  ;;  %s606_s17 = sphi %s638_s17, %s14_s17   ;;  %s602_s16 = sphi %s636_s16, %s733_s16   ;;  %s598_s15 = sphi %s634_s15, %s732_s15  }
   0x3   : > { %p28_p1 = scmp.ge.s32.totalorder %s26_s18, 2  ;;  %p200_p2 = scmp.lt.s32.totalorder %s606_s17, 3 }
   0x5   : > { %s735_s18 = smov (%p28_p1, %s26_s18), 0  ;;  %p201_p3 = pnand %p529_p0, %p200_p2 }
   0x6   : > { %p244_p4 = scmp.lt.s32.totalorder (!%p201_p3), %s598_s15, 1 }
   0x7   : > { %204 = sbr.rel (%p201_p3) target bundleno = 174 (0xae), region = 36 }
   0xc   : > { %v608_v0 = vmov 0   ;;  %v287_v1 = vld [vmem:[%s730_s3 + $0x10] sm:$0xff]  ;;  %v285_v2 = vld [vmem:[%s730_s3] sm:$0xff]  ;;  %s737_s15 = smov (!%p244_p4, %s598_s15), 1  ;;  %vm309_vm0 = vcmask 261120   ;;  %v288_v13 = vld [vmem:[%s730_s3 + $0x18] sm:$0xff] }
   0xd   : > { %583 = vset.pattern.permute.xlu1 %v608_v0  ;;  %582 = vset.pattern.permute.xlu0 %v608_v0  ;;  %s658_s23 = sshll.u32 %s737_s15, 6  ;;  %v273_v11 = vld [vmem:[%s729_s2] sm:$0xff]  ;;  %v275_v12 = vld [vmem:[%s729_s2 + $0x10] sm:$0xff]  ;;  %v286_v14 = vld [vmem:[%s730_s3 + $0x8] sm:$0xff] }
   0xe   : > { %301 = vperm.xlu1 %583, %v287_v1   ;;  %291 = vperm.xlu0 %582, %v285_v2   ;;  %s251_s26 = scalar_lea.vmem %s727_s0, %s658_s23  ;;  %v274_v15 = vld [vmem:[%s729_s2 + $0x8] sm:$0xff]  ;;  %v276_v16 = vld [vmem:[%s729_s2 + $0x18] sm:$0xff]  ;;  %s694_s15 = scalar_lea.vmem %s728_s1, %s658_s23 }
   0xf   : > { %v283_v3 = vld [vmem:[%s251_s26 + $0x30] sm:$0xff]  ;;  %v284_v4 = vld [vmem:[%s251_s26 + $0x38] sm:$0xff]  ;;  %v281_v5 = vld [vmem:[%s251_s26 + $0x20] sm:$0xff]  ;;  %s702_s21 = scalar_lea.vmem %s731_s4, %s658_s23 }
  0x10   : > { %334 = vmatpush.msra.mxu0 %v283_v3  ;;  %549 = vmatpush.msra.mxu2 %v283_v3  ;;  %v282_v6 = vld [vmem:[%s251_s26 + $0x28] sm:$0xff]  ;;  %v279_v7 = vld [vmem:[%s251_s26 + $0x10] sm:$0xff]  ;;  %v280_v8 = vld [vmem:[%s251_s26 + $0x18] sm:$0xff] }
  0x11   : > { %363 = vmatpush.msra.mxu1 %v284_v4  ;;  %553 = vmatpush.msra.mxu3 %v284_v4  ;;  %v277_v9 = vld [vmem:[%s251_s26] sm:$0xff]  ;;  %v278_v10 = vld [vmem:[%s251_s26 + $0x8] sm:$0xff]  ;;  %v390_v43 = vld [vmem:[%s694_s15 + $0x10] sm:$0xff] }
  0x12   : > { %335 = vmatpush.msra.mxu0 %v281_v5  ;;  %550 = vmatpush.msra.mxu2 %v281_v5  ;;  %v388_v21 = vld [vmem:[%s694_s15] sm:$0xff]  ;;  %v389_v24 = vld [vmem:[%s694_s15 + $0x8] sm:$0xff]  ;;  %v391_v47 = vld [vmem:[%s694_s15 + $0x18] sm:$0xff] }
  0x13   : > { %364 = vmatpush.msra.mxu1 %v282_v6  ;;  %554 = vmatpush.msra.mxu3 %v282_v6  ;;  %v392_v35 = vld [vmem:[%s694_s15 + $0x20] sm:$0xff]  ;;  %v393_v39 = vld [vmem:[%s694_s15 + $0x28] sm:$0xff]  ;;  %v394_v60 = vld [vmem:[%s694_s15 + $0x30] sm:$0xff] }
  0x14   : > { %336 = vmatpush.msra.mxu0 %v279_v7  ;;  %551 = vmatpush.msra.mxu2 %v279_v7  ;;  %v395_v63 = vld [vmem:[%s694_s15 + $0x38] sm:$0xff] }
  0x15   : > { %365 = vmatpush.msra.mxu1 %v280_v8  ;;  %555 = vmatpush.msra.mxu3 %v280_v8 }
  0x16   : > { %337 = vmatpush.msra.mxu0 %v277_v9  ;;  %552 = vmatpush.msra.mxu2 %v277_v9 }
  0x17   : > { %366 = vmatpush.msra.mxu1 %v278_v10  ;;  %556 = vmatpush.msra.mxu3 %v278_v10 }
  0x18   : > { %536 = vmatmul.msk.f32.vlgmr.msra.gmra.mxu0 %vm309_vm0, %v273_v11  ;;  %538 = vmatmul.msk.f32.vlgmr.msra.gmra.mxu2 %vm309_vm0, %v275_v12 }
  0x19   : > { %540 = vmatmul.msk.f32.vlgmr.msra.gmra.mxu1 %vm309_vm0, %v273_v11  ;;  %542 = vmatmul.msk.f32.vlgmr.msra.gmra.mxu3 %vm309_vm0, %v275_v12 }
  0x1a   : > { %306 = vperm.xlu1 %583, %v288_v13   ;;  %296 = vperm.xlu0 %582, %v286_v14  }
  0x20   : > { %537 = vmatmul.msk.f32.gmra.mxu0 %vm309_vm0, %v274_v15  ;;  %539 = vmatmul.msk.f32.gmra.mxu2 %vm309_vm0, %v276_v16 }
  0x21   : > { %541 = vmatmul.msk.f32.gmra.mxu1 %vm309_vm0, %v274_v15  ;;  %543 = vmatmul.msk.f32.gmra.mxu3 %vm309_vm0, %v276_v16 }
  0x80   : > { %v292_v17 = vpop.permute.xlu0 %291  ;;  %v302_v25 = vpop.permute.xlu1 %301 }
  0x8c   : > { %v297_v34 = vpop.permute.xlu0 %296  ;;  %v307_v52 = vpop.permute.xlu1 %306 }
  0x95   : > { %v339_v18 = vpop.f32.mrf.mxu0 }
  0x96   : > { %v340_v19 = vadd.f32 %v339_v18, %v292_v17  ;;  %v368_v20 = vpop.f32.mrf.mxu1 }
  0x97   : > { %v369_v22 = vadd.f32 %v368_v20, %v292_v17 }
  0x98   : > { %v380_v23 = vmax.f32 %v340_v19, 0.0 }
  0x99   : > { %v381_v26 = vmax.f32 %v369_v22, 0.0 }
  0x9a   : > { %v396_v27 = vmul.f32 %v388_v21, %v380_v23 }
  0x9b   : > { %v397_v28 = vmul.f32 %v389_v24, %v381_v26  ;;  %v345_v29 = vpop.f32.mrf.mxu2 }
  0x9c   : > { %v404_v30 = vadd.f32 %v396_v27, %v388_v21  ;;  %v346_v31 = vadd.f32 %v345_v29, %v302_v25  ;;  %v374_v32 = vpop.f32.mrf.mxu3 }
  0x9d   : > { %v405_v33 = vadd.f32 %v397_v28, %v389_v24  ;;  %v375_v36 = vadd.f32 %v374_v32, %v302_v25  ;;  %v342_v37 = vpop.f32.mrf.mxu0 }
  0x9e   : > { %412 = vst [vmem:[%s702_s21] sm:$0xff] %v404_v30  ;;  %v384_v38 = vmax.f32 %v346_v31, 0.0  ;;  %v343_v40 = vadd.f32 %v342_v37, %v297_v34  ;;  %v371_v41 = vpop.f32.mrf.mxu1 }
  0x9f   : > { %413 = vst [vmem:[%s702_s21 + $0x8] sm:$0xff] %v405_v33  ;;  %v385_v42 = vmax.f32 %v375_v36, 0.0  ;;  %v372_v44 = vadd.f32 %v371_v41, %v297_v34 }
  0xa0   : > { %v400_v45 = vmul.f32 %v392_v35, %v384_v38  ;;  %v382_v46 = vmax.f32 %v343_v40, 0.0 }
  0xa1   : > { %v401_v48 = vmul.f32 %v393_v39, %v385_v42  ;;  %v383_v49 = vmax.f32 %v372_v44, 0.0 }
  0xa2   : > { %v408_v50 = vadd.f32 %v400_v45, %v392_v35  ;;  %v398_v51 = vmul.f32 %v390_v43, %v382_v46 }
  0xa3   : > { %v409_v53 = vadd.f32 %v401_v48, %v393_v39  ;;  %v399_v54 = vmul.f32 %v391_v47, %v383_v49  ;;  %v348_v55 = vpop.f32.mrf.mxu2 }
  0xa4   : > { %416 = vst [vmem:[%s702_s21 + $0x20] sm:$0xff] %v408_v50  ;;  %v406_v56 = vadd.f32 %v398_v51, %v390_v43  ;;  %v349_v57 = vadd.f32 %v348_v55, %v307_v52  ;;  %v377_v58 = vpop.f32.mrf.mxu3 }
  0xa5   : > { %417 = vst [vmem:[%s702_s21 + $0x28] sm:$0xff] %v409_v53  ;;  %v407_v59 = vadd.f32 %v399_v54, %v391_v47  ;;  %v378_v61 = vadd.f32 %v377_v58, %v307_v52 }
  0xa6   : > { %414 = vst [vmem:[%s702_s21 + $0x10] sm:$0xff] %v406_v56  ;;  %v386_v62 = vmax.f32 %v349_v57, 0.0 }
  0xa7   : > { %415 = vst [vmem:[%s702_s21 + $0x18] sm:$0xff] %v407_v59  ;;  %v387_v0 = vmax.f32 %v378_v61, 0.0 }
  0xa8   : > { %v402_v1 = vmul.f32 %v394_v60, %v386_v62 }
  0xa9   : > { %v403_v2 = vmul.f32 %v395_v63, %v387_v0 }
  0xaa   : > { %v410_v3 = vadd.f32 %v402_v1, %v394_v60 }
  0xab   : > { %v411_v4 = vadd.f32 %v403_v2, %v395_v63 }
  0xac   : > { %418 = vst [vmem:[%s702_s21 + $0x30] sm:$0xff] %v410_v3 }
  0xad   : > { %419 = vst [vmem:[%s702_s21 + $0x38] sm:$0xff] %v411_v4 }
  0xae PF: > { %s14_s17 = sadd.s32 1, %s606_s17   ;;  %s732_s15 = smov %s602_s16 }
  0xaf   : > { %p11_p5 = scmp.ge.s32.totalorder %s14_s17, 4   ;;  %s733_s16 = smov %s735_s18 }
  0xb1   :  { %13 = sbr.rel (!%p11_p5) target bundleno = 2 (0x2), region = 69 }

</bundles_post_ra>
